<compile_context>
chip_gen: v7x
topology: tpu7x:2x2x1
jax: 0.10.0
libtpu: 0.0.40
codegen_flags: <defaults>
</compile_context>

<pallas_src>
import jax
import jax.numpy as jnp
from jax.experimental import pallas as pl
from jax.experimental.pallas import tpu as pltpu


def _round_up(n, m):
    return ((n + m - 1) // m) * m


def _pattern_encoder_kernel(x_ref, w1_ref, b1_ref, w2_ref, b2_ref, o_ref):
    # Fused MLP hot path: (x @ W1 + b1) -> ReLU -> (@ W2 + b2).
    x = x_ref[...]                                             # (TB, D_in)
    h = jnp.dot(x, w1_ref[...], preferred_element_type=jnp.float32)
    h = jnp.maximum(h + b1_ref[...], 0.0)                      # (TB, H), f32
    y = jnp.dot(h.astype(w2_ref.dtype), w2_ref[...],
                preferred_element_type=jnp.float32)
    o_ref[...] = (y + b2_ref[...]).astype(o_ref.dtype)         # (TB, L)


def pattern_encoder(x, w1, b1, w2, b2, *, block_batch=2048):
    """x: (B, D_in); w1: (D_in, H); b1: (H,); w2: (H, L); b2: (L,) -> (B, L)."""
    B, D_in = x.shape
    H = w1.shape[1]
    L = w2.shape[1]

    # Batch tile: a sublane multiple, at most `block_batch` rows. No padding of
    # the batch is done; Pallas masks the partial last block.
    TB = min(_round_up(block_batch, 8), _round_up(B, 8))
    grid = (pl.cdiv(B, TB),)

    b1_2d = b1.reshape(1, H)
    b2_2d = b2.reshape(1, L)

    cost = pl.CostEstimate(
        flops=2 * B * (D_in * H + H * L),
        transcendentals=0,
        bytes_accessed=4 * (B * D_in + B * L + D_in * H + H + H * L + L),
    )

    return pl.pallas_call(
        _pattern_encoder_kernel,
        out_shape=jax.ShapeDtypeStruct((B, L), x.dtype),
        grid_spec=pl.GridSpec(
            grid=grid,
            in_specs=[
                pl.BlockSpec((TB, D_in), lambda i: (i, 0)),   # activations: tiled
                pl.BlockSpec((D_in, H), lambda i: (0, 0)),    # weights: resident
                pl.BlockSpec((1, H), lambda i: (0, 0)),
                pl.BlockSpec((H, L), lambda i: (0, 0)),
                pl.BlockSpec((1, L), lambda i: (0, 0)),
            ],
            out_specs=pl.BlockSpec((TB, L), lambda i: (i, 0)),
        ),
        compiler_params=pltpu.CompilerParams(
            dimension_semantics=("parallel",)),
        cost_estimate=cost,
    )(x, w1, b1_2d, w2, b2_2d)


def init_params(key, input_dim, latent_dim, hidden_dim=64, dtype=jnp.float32):
    # Deterministic synthetic init (uniform, like PyTorch's default Linear init).
    k1, k2, k3, k4 = jax.random.split(key, 4)
    bound1 = 1.0 / (input_dim ** 0.5)
    bound2 = 1.0 / (hidden_dim ** 0.5)
    w1 = jax.random.uniform(k1, (input_dim, hidden_dim), dtype, -bound1, bound1)
    b1 = jax.random.uniform(k2, (hidden_dim,), dtype, -bound1, bound1)
    w2 = jax.random.uniform(k3, (hidden_dim, latent_dim), dtype, -bound2, bound2)
    b2 = jax.random.uniform(k4, (latent_dim,), dtype, -bound2, bound2)
    return w1, b1, w2, b2


def reference(x, w1, b1, w2, b2):
    h = jnp.maximum(x @ w1 + b1, 0.0)
    return h @ w2 + b2


if __name__ == "__main__":
    input_dim, hidden_dim, latent_dim = 16, 64, 32

    key = jax.random.PRNGKey(0)
    kx, kp, kx2 = jax.random.split(key, 3)
    w1, b1, w2, b2 = init_params(kp, input_dim, latent_dim, hidden_dim)

    # Small shape (single batch tile).
    batch = 8
    x = jax.random.normal(kx, (batch, input_dim), jnp.float32)
    out = jax.block_until_ready(pattern_encoder(x, w1, b1, w2, b2))
    ref = reference(x, w1, b1, w2, b2)
    assert out.shape == (batch, latent_dim)
    assert jnp.allclose(out, ref, atol=1e-5, rtol=1e-5)

    # Multi-tile path with a partial last block (B not a multiple of the tile).
    batch2 = 200
    x2 = jax.random.normal(kx2, (batch2, input_dim), jnp.float32)
    out2 = jax.block_until_ready(
        pattern_encoder(x2, w1, b1, w2, b2, block_batch=64))
    ref2 = reference(x2, w1, b1, w2, b2)
    assert out2.shape == (batch2, latent_dim)
    assert jnp.allclose(out2, ref2, atol=1e-5, rtol=1e-5)

    print("KERNEL_OK")
</pallas_src>

<mosaic_0001>
module attributes {stable_mosaic.version = 11 : i64} {
  func.func @_pattern_encoder_kernel(%arg0: i32, %arg1: memref<8x16xf32, #tpu.memory_space<vmem>>, %arg2: memref<16x64xf32, #tpu.memory_space<vmem>>, %arg3: memref<1x64xf32, #tpu.memory_space<vmem>>, %arg4: memref<64x32xf32, #tpu.memory_space<vmem>>, %arg5: memref<1x32xf32, #tpu.memory_space<vmem>>, %arg6: memref<8x32xf32, #tpu.memory_space<vmem>>) attributes {dimension_semantics = [#tpu.dimension_semantics<parallel>], iteration_bounds = array<i64: 1>, scalar_prefetch = 0 : i64, scratch_operands = 0 : i64, tpu.core_type = #tpu.core_type<tc>, window_params = [{transform_indices = @transform_0, window_bounds = array<i64: 8, 16>}, {pipeline_mode = #tpu.pipeline_mode<synchronous>, transform_indices = @transform_1, window_bounds = array<i64: 16, 64>}, {pipeline_mode = #tpu.pipeline_mode<synchronous>, transform_indices = @transform_2, window_bounds = array<i64: 1, 64>}, {pipeline_mode = #tpu.pipeline_mode<synchronous>, transform_indices = @transform_3, window_bounds = array<i64: 64, 32>}, {pipeline_mode = #tpu.pipeline_mode<synchronous>, transform_indices = @transform_4, window_bounds = array<i64: 1, 32>}, {transform_indices = @transform_5, window_bounds = array<i64: 8, 32>}]} {
    %c0 = arith.constant 0 : index
    %c0_0 = arith.constant 0 : index
    %0 = vector.load %arg1[%c0, %c0_0] : memref<8x16xf32, #tpu.memory_space<vmem>>, vector<8x16xf32>
    %c0_1 = arith.constant 0 : index
    %c0_2 = arith.constant 0 : index
    %1 = vector.load %arg2[%c0_1, %c0_2] : memref<16x64xf32, #tpu.memory_space<vmem>>, vector<16x64xf32>
    %cst = arith.constant dense<0.000000e+00> : vector<8x64xf32>
    %2 = tpu.matmul %0, %1, %cst {dimension_numbers = #tpu.dot_dimension_numbers<[1], [0], [0], [1], [0, 0, 1, 1], [], []>} : vector<8x16xf32>, vector<16x64xf32>, vector<8x64xf32> -> vector<8x64xf32>
    %c0_3 = arith.constant 0 : index
    %c0_4 = arith.constant 0 : index
    %3 = vector.load %arg3[%c0_3, %c0_4] : memref<1x64xf32, #tpu.memory_space<vmem>>, vector<1x64xf32>
    %4 = vector.broadcast %3 : vector<1x64xf32> to vector<8x64xf32>
    %5 = arith.addf %2, %4 : vector<8x64xf32>
    %cst_5 = arith.constant 0.000000e+00 : f32
    %6 = vector.broadcast %cst_5 : f32 to vector<8x64xf32>
    %7 = arith.maximumf %5, %6 : vector<8x64xf32>
    %c0_6 = arith.constant 0 : index
    %c0_7 = arith.constant 0 : index
    %8 = vector.load %arg4[%c0_6, %c0_7] : memref<64x32xf32, #tpu.memory_space<vmem>>, vector<64x32xf32>
    %cst_8 = arith.constant dense<0.000000e+00> : vector<8x32xf32>
    %9 = tpu.matmul %7, %8, %cst_8 {dimension_numbers = #tpu.dot_dimension_numbers<[1], [0], [0], [1], [0, 0, 1, 1], [], []>} : vector<8x64xf32>, vector<64x32xf32>, vector<8x32xf32> -> vector<8x32xf32>
    %c0_9 = arith.constant 0 : index
    %c0_10 = arith.constant 0 : index
    %10 = vector.load %arg5[%c0_9, %c0_10] : memref<1x32xf32, #tpu.memory_space<vmem>>, vector<1x32xf32>
    %11 = vector.broadcast %10 : vector<1x32xf32> to vector<8x32xf32>
    %12 = arith.addf %9, %11 : vector<8x32xf32>
    %c0_11 = arith.constant 0 : index
    %c0_12 = arith.constant 0 : index
    %13 = vector.load %arg6[%c0_11, %c0_12] : memref<8x32xf32, #tpu.memory_space<vmem>>, vector<8x32xf32>
    tpu.vector_store %arg6[%c0_11, %c0_12], %12 {strides = array<i32>} : memref<8x32xf32, #tpu.memory_space<vmem>>, vector<8x32xf32>,
    return
  }
  func.func @transform_0(%arg0: i32) -> (i32, i32) {
    %c0_i32 = arith.constant 0 : i32
    %c0_i32_0 = arith.constant 0 : i32
    return %arg0, %c0_i32 : i32, i32
  }
  func.func @transform_1(%arg0: i32) -> (i32, i32) {
    %c0_i32 = arith.constant 0 : i32
    %c0_i32_0 = arith.constant 0 : i32
    %c0_i32_1 = arith.constant 0 : i32
    return %c0_i32, %c0_i32_0 : i32, i32
  }
  func.func @transform_2(%arg0: i32) -> (i32, i32) {
    %c0_i32 = arith.constant 0 : i32
    %c0_i32_0 = arith.constant 0 : i32
    %c0_i32_1 = arith.constant 0 : i32
    return %c0_i32, %c0_i32_0 : i32, i32
  }
  func.func @transform_3(%arg0: i32) -> (i32, i32) {
    %c0_i32 = arith.constant 0 : i32
    %c0_i32_0 = arith.constant 0 : i32
    %c0_i32_1 = arith.constant 0 : i32
    return %c0_i32, %c0_i32_0 : i32, i32
  }
  func.func @transform_4(%arg0: i32) -> (i32, i32) {
    %c0_i32 = arith.constant 0 : i32
    %c0_i32_0 = arith.constant 0 : i32
    %c0_i32_1 = arith.constant 0 : i32
    return %c0_i32, %c0_i32_0 : i32, i32
  }
  func.func @transform_5(%arg0: i32) -> (i32, i32) {
    %c0_i32 = arith.constant 0 : i32
    %c0_i32_0 = arith.constant 0 : i32
    return %arg0, %c0_i32 : i32, i32
  }
}

</mosaic_0001>

<bundles_post_ra>
// kernel: tpu_custom_call.1
= control target key start
LH: loop header
LB: loop body
LE: loop exit
PB: predicated region body
PF: predicated region fallthrough
CT: control target
= control target key end

     0   :  { %v296_v2 = vmov 0.0|0.0   ;;  %vm297_vm0 = vmmov 0   ;;  %v298_v4 = vmov 0.0   ;;  %vm31_vm1 = vcmask 130048   ;;  %s381_s0 = inlined_call_operand.vmem [shape: f32[8,16], index: 0, kind: input, shape index: {}]   ;;  %s382_s1 = inlined_call_operand.vmem [shape: f32[16,64], index: 1, kind: input, shape index: {}]   ;;  %s383_s2 = inlined_call_operand.vmem [shape: f32[1,64], index: 2, kind: input, shape index: {}]   ;;  %s384_s3 = inlined_call_operand.vmem [shape: f32[64,32], index: 3, kind: input, shape index: {}]   ;;  %s385_s4 = inlined_call_operand.vmem [shape: f32[1,32], index: 4, kind: input, shape index: {}]   ;;  %s386_s5 = inlined_call_operand.hbm [shape: f32[8,32], index: 5, kind: output, shape index: {}]  }
   0x1   :  { %v22_v0 = vld [vmem:[%s382_s1] sm:$0xff]  ;;  %v23_v1 = vld [vmem:[%s382_s1 + $0x8] sm:$0xff]  ;;  %253 = vmatprep.subr.bf16.mxu0 %v296_v2  ;;  %231 = vmatprep.mubr.msk.f32.mxu0 %vm297_vm0, %v298_v4  ;;  %v108_v7 = vld [vmem:[%s384_s3 + $0x10] sm:$0xff] }
   0x2   :  { %v254_v3 = vpack.c.bf16 %v23_v1, %v22_v0  ;;  %v106_v5 = vld [vmem:[%s384_s3] sm:$0xff]  ;;  %v107_v6 = vld [vmem:[%s384_s3 + $0x8] sm:$0xff]  ;;  %256 = vmatprep.subr.bf16.mxu1 %v296_v2  ;;  %v109_v9 = vld [vmem:[%s384_s3 + $0x18] sm:$0xff]  ;;  %250 = vmatprep.mubr.msk.f32.mxu1 %vm297_vm0, %v298_v4 }
   0x3   :  { %v257_v8 = vpack.c.bf16 %v107_v6, %v106_v5  ;;  %v21_v10 = vld [vmem:[%s381_s0] sm:$0xff] }
   0x4   :  { %255 = vmatpush3.bf16.msra.mxu0 %v254_v3 }
   0x5   :  { %10 = vsyncpa [#allocation3], 0  ;;  %258 = vmatpush3.bf16.msra.mxu1 %v257_v8  ;;  %v260_v11 = vpack.c.bf16 %v109_v9, %v108_v7  ;;  %v110_v12 = vld [vmem:[%s384_s3 + $0x20] sm:$0xff]  ;;  %v111_v13 = vld [vmem:[%s384_s3 + $0x28] sm:$0xff]  ;;  %vm121_vm2 = vcmask 523264   ;;  %s299_s17 = smov [#allocation2]  }
   0x6   :  { %259 = vmatprep.subr.bf16.mxu1 %v296_v2  ;;  %v263_v14 = vpack.c.bf16 %v111_v13, %v110_v12  ;;  %v112_v15 = vld [vmem:[%s384_s3 + $0x30] sm:$0xff]  ;;  %v113_v16 = vld [vmem:[%s384_s3 + $0x38] sm:$0xff]  ;;  %v211_v18 = vld [vmem:[%s383_s2] ss:$0 sm:$0xff]  ;;  %s203_s18 = sshll.u32 %s299_s17, 4  ;;  %vm195_vm3 = vcmask 261120   ;;  %s204_s18 = int_to_ptr.vmem [resolvable:$true] %s203_s18 }
   0x7   :  { %232 = vmatmul.mubr.msk.f32.vlgmr.msra.gmra.mrb[0].mxu0 %vm31_vm1, %v21_v10  ;;  %v266_v17 = vpack.c.bf16 %v113_v16, %v112_v15  ;;  %v213_v23 = vld [vmem:[%s385_s4] ss:$0 sm:$0xff]  ;;  %s272_s3 = scalar_lea.vmem %s204_s18, 128  ;;  %p277_p1 = scmp.lt.s32.totalorder %s204_s18, %s204_s18 }
   0x8   :  { %p273_p0 = scmp.ne.s32.totalorder %s204_s18, %s272_s3  ;;  %p278_p2 = scmp.lt.s32.totalorder %s272_s3, %s272_s3 }
   0x9   :  { %261 = vmatpush3.bf16.msra.mxu1 %v260_v11 }
   0xa   :  { %262 = vmatprep.subr.bf16.mxu1 %v296_v2  ;;  %p279_p3 = por %p278_p2, %p277_p1 }
   0xc   :  { %p280_p4 = pnand %p279_p3, %p273_p0 }
   0xd   :  { %264 = vmatpush3.bf16.msra.mxu1 %v263_v14 }
   0xe   :  { %265 = vmatprep.subr.bf16.mxu1 %v296_v2 }
  0x11   :  { %267 = vmatpush3.bf16.msra.mxu1 %v266_v17 }
  0xda   :  { %v101_v19 = vpop.f32.mrb[0].mxu0 }
  0xdb   :  { %v102_v20 = vadd.f32 %v211_v18, %v101_v19  ;;  %v233_v21 = vpop.f32.mrb[1].mxu0 }
  0xdd   :  { %v105_v22 = vmax.f32 %v102_v20, 0.0 }
  0xdf   :  { %251 = vmatmul.mubr.msk.f32.vlgmr.msra.gmra.mrb[0].mxu1 %vm121_vm2, %v105_v22 }
 0x1b2   :  { %v191_v24 = vpop.f32.mrb[0].mxu1 }
 0x1b3   :  { %v192_v25 = vadd.f32 %v213_v23, %v191_v24  ;;  %v252_v26 = vpop.f32.mrb[1].mxu1 }
 0x1b5   :  { %196 = vst.msk [vmem:[#allocation2] sm:$0xff] %vm195_vm3, %v192_v25 }
 0x1b6   :  { %283 = shalt.err (!%p280_p4)
}
 0x1b7   :  { %s284_s20 = scalar_lea.hbm %s386_s5, 128 }
 0x1b8   :  { %p285_p5 = scmp.ne.s32.totalorder %s386_s5, %s284_s20  ;;  %p288_p6 = scmp.lt.u32.totalorder %s284_s20, %s386_s5 }
 0x1ba   :  { %p290_p7 = pnand %p288_p6, %p285_p5 }
 0x1bc   :  { %293 = shalt.err (!%p290_p7)
}
 0x1bd   :  { %206 = dma.vmem_to_hbm [thread:$0]  %s204_s18, 128, %s386_s5, [#allocation3]  }
 0x1be   :  { %294 = dma.done.wait [#allocation3], 128  }
 0x1bf   :  { %295 = vsyncadd [#allocation3], 4294967168 }
 0x1c0   :  { %210 = vsyncpa [#allocation3], 1 }

</bundles_post_ra>
